<compile_context>
chip_gen: v7x
topology: tpu7x:2x2x1
jax: 0.10.0
libtpu: 0.0.40
codegen_flags: <defaults>
</compile_context>

<pallas_src>
import functools

import jax
import jax.numpy as jnp
from jax.experimental import pallas as pl
from jax.experimental.pallas import tpu as pltpu

_OUT_LANES = 128  # lane-dense slab per feature tile for the partial outputs


def _kln01_kernel(x_ref, out_ref, sum_ref, sumsq_ref, *,
                  n_rows: int, d_total: int, tile_n: int,
                  minimize: bool, direction: str, need_mask: bool):
    """Grid = (num_d_tiles ["parallel"], num_n_tiles ["arbitrary"])."""
    ni = pl.program_id(1)

    # --- init accumulators at the start of each batch-axis reduction ---
    @pl.when(ni == 0)
    def _():
        sum_ref[...] = jnp.zeros_like(sum_ref)
        sumsq_ref[...] = jnp.zeros_like(sumsq_ref)

    # --- streaming single-pass accumulation (f32) ---
    x = x_ref[...].astype(jnp.float32)                      # (tile_n, tile_d)
    if need_mask:  # last batch tile may overrun N; zero out padded rows
        rows = ni * tile_n + jax.lax.broadcasted_iota(jnp.int32, x.shape, 0)
        x = jnp.where(rows < n_rows, x, 0.0)

    sum_ref[...] += jnp.sum(x, axis=0, keepdims=True)       # (1, tile_d)
    sumsq_ref[...] += jnp.sum(x * x, axis=0, keepdims=True)  # (1, tile_d)

    # --- finalize: mean/var -> per-feature KL -> scaled partial sum ---
    @pl.when(ni == pl.num_programs(1) - 1)
    def _():
        inv_n = 1.0 / float(n_rows)
        mean = sum_ref[...] * inv_n
        var_ = sumsq_ref[...] * inv_n - mean * mean          # biased variance
        if direction == 'pq':
            t1 = (1.0 + mean * mean) / (2.0 * var_ * var_)
            t2 = jnp.log(var_)
        else:  # 'qp'
            t1 = (var_ * var_ + mean * mean) * 0.5
            t2 = -jnp.log(var_)
        sign = 1.0 if minimize else -1.0
        # already scaled by sign / D so the wrapper only has to sum partials
        partial = jnp.sum(t1 + t2 - 0.5, axis=-1, keepdims=True) * (sign / float(d_total))
        out_ref[...] = jnp.broadcast_to(partial, out_ref.shape)  # lane-dense store


def _pick_tiles(n: int, d: int, itemsize: int):
    """Choose (tile_n, tile_d) aligned to (8,128) and sized for every TPU gen."""
    # Feature tile: full D unless D is large and 128-aligned, in which case a
    # 128/256-lane tile lets v7x shard the "parallel" D axis across its 2 TCs.
    if d >= 256 and d % 128 == 0:
        tile_d = 256 if d % 256 == 0 else 128
    else:
        tile_d = d
    # Batch tile: biggest aligned tile whose double-buffered input block stays
    # far below the default scoped VMEM (16 MiB v5e / 32 MiB v6e/v7x).
    target_bytes = 4 << 20                      # ~4 MiB per input block
    tn = max(8, target_bytes // max(1, tile_d * itemsize))
    align = 16 if itemsize < 4 else 8           # bf16 packs 16 rows / sublane pair
    tn = max(align, (tn // align) * align)
    tile_n = n if tn >= n else tn               # full-dim block is always legal
    return tile_n, tile_d


def kln01_loss(samples: jax.Array, *, minimize: bool = True,
               direction: str = 'qp', tile_n: int | None = None,
               tile_d: int | None = None) -> jax.Array:
    """Pallas TPU implementation of KLN01Loss.forward on (N, D) samples."""
    assert direction in ('pq', 'qp'), 'direction?'
    assert samples.ndim == 2, 'wtf?'   # mirrors nelement == size(0)*size(1)
    n, d = samples.shape
    itemsize = jnp.dtype(samples.dtype).itemsize

    auto_tn, auto_td = _pick_tiles(n, d, itemsize)
    tile_n = min(n, tile_n) if tile_n is not None else auto_tn
    tile_d = tile_d if tile_d is not None else auto_td
    assert d % tile_d == 0, 'feature tile must divide D'

    num_d = d // tile_d
    num_n = pl.cdiv(n, tile_n)
    need_mask = (n % tile_n) != 0

    kernel = functools.partial(
        _kln01_kernel, n_rows=n, d_total=d, tile_n=tile_n,
        minimize=minimize, direction=direction, need_mask=need_mask)

    partials = pl.pallas_call(
        kernel,
        out_shape=jax.ShapeDtypeStruct((1, num_d * _OUT_LANES), jnp.float32),
        grid_spec=pltpu.PrefetchScalarGridSpec(
            num_scalar_prefetch=0,
            grid=(num_d, num_n),                 # reduction axis (N) last
            in_specs=[pl.BlockSpec((tile_n, tile_d),
                                   lambda di, ni: (ni, di))],
            # one lane-dense 128-wide slab per D tile; index does not depend on
            # ni, so the block stays resident across the whole N reduction.
            out_specs=pl.BlockSpec((1, _OUT_LANES),
                                   lambda di, ni: (0, di)),
            scratch_shapes=[pltpu.VMEM((1, tile_d), jnp.float32),   # sum
                            pltpu.VMEM((1, tile_d), jnp.float32)]), # sumsq
        compiler_params=pltpu.CompilerParams(
            dimension_semantics=("parallel", "arbitrary")),
        cost_estimate=pl.CostEstimate(
            flops=3 * n * d + 10 * d,
            transcendentals=d,
            bytes_accessed=n * d * itemsize + num_d * _OUT_LANES * 4),
    )(samples)

    # Combine per-D-tile partials (each already scaled by sign / D).
    return jnp.sum(partials.reshape(num_d, _OUT_LANES)[:, 0])


def _kln01_ref(samples, *, minimize=True, direction='qp'):
    """Pure-JAX reference mirroring the PyTorch module (two-pass variance)."""
    x = samples.astype(jnp.float32)
    mean = x.mean(0)
    var_ = ((x - mean[None, :]) ** 2).mean(0)
    if direction == 'pq':
        kl = ((1 + mean ** 2) / (2 * var_ ** 2) + jnp.log(var_) - 0.5).mean()
    else:
        kl = ((var_ ** 2 + mean ** 2) / 2 - jnp.log(var_) - 0.5).mean()
    return kl if minimize else -kl


if __name__ == "__main__":
    key = jax.random.PRNGKey(0)

    # 1) default path (single block), 'qp', minimize=True
    N, D = 8, 32
    samples = jax.random.normal(key, (N, D), dtype=jnp.float32)
    out = jax.block_until_ready(kln01_loss(samples, minimize=True, direction='qp'))
    ref = _kln01_ref(samples, minimize=True, direction='qp')
    assert jnp.allclose(out, ref, rtol=1e-5, atol=1e-5), (out, ref)

    # 2) 'pq' direction, maximize
    out = jax.block_until_ready(kln01_loss(samples, minimize=False, direction='pq'))
    ref = _kln01_ref(samples, minimize=False, direction='pq')
    assert jnp.allclose(out, ref, rtol=1e-5, atol=1e-5), (out, ref)

    # 3) uneven batch tiling: grid over N with row masking on the last tile
    s2 = jax.random.normal(jax.random.fold_in(key, 1), (20, 32), jnp.float32) * 0.5 + 0.25
    out = jax.block_until_ready(kln01_loss(s2, tile_n=8))
    ref = _kln01_ref(s2)
    assert jnp.allclose(out, ref, rtol=1e-5, atol=1e-5), (out, ref)

    # 4) feature-axis sharding path: two 128-lane D tiles on the "parallel" axis
    s3 = jax.random.normal(jax.random.fold_in(key, 2), (16, 256), jnp.float32) + 1.0
    out = jax.block_until_ready(kln01_loss(s3, tile_n=8, tile_d=128))
    ref = _kln01_ref(s3)
    assert jnp.allclose(out, ref, rtol=1e-5, atol=1e-5), (out, ref)

    print("KERNEL_OK")
</pallas_src>

<mosaic_0001>
module attributes {stable_mosaic.version = 11 : i64} {
  func.func @_kln01_kernel(%arg0: i32, %arg1: i32, %arg2: memref<8x32xf32, #tpu.memory_space<vmem>>, %arg3: memref<1x128xf32, #tpu.memory_space<vmem>>, %arg4: memref<1x32xf32, #tpu.memory_space<vmem>>, %arg5: memref<1x32xf32, #tpu.memory_space<vmem>>) attributes {dimension_semantics = [#tpu.dimension_semantics<parallel>, #tpu.dimension_semantics<arbitrary>], iteration_bounds = array<i64: 1, 1>, scalar_prefetch = 0 : i64, scratch_operands = 2 : i64, tpu.core_type = #tpu.core_type<tc>, window_params = [{transform_indices = @transform_0, window_bounds = array<i64: 8, 32>}, {transform_indices = @transform_1, window_bounds = array<i64: 1, 128>}]} {
    %c0_i32 = arith.constant 0 : i32
    %0 = arith.cmpi eq, %arg1, %c0_i32 : i32
    %1 = arith.extui %0 : i1 to i32
    %c0_i32_0 = arith.constant 0 : i32
    %2 = arith.cmpi ne, %1, %c0_i32_0 : i32
    scf.if %2 {
      %cst_13 = arith.constant 0.000000e+00 : f32
      %18 = vector.broadcast %cst_13 : f32 to vector<1x32xf32>
      %c0_14 = arith.constant 0 : index
      %c0_15 = arith.constant 0 : index
      %19 = vector.load %arg4[%c0_14, %c0_15] : memref<1x32xf32, #tpu.memory_space<vmem>>, vector<1x32xf32>
      tpu.vector_store %arg4[%c0_14, %c0_15], %18 {strides = array<i32>} : memref<1x32xf32, #tpu.memory_space<vmem>>, vector<1x32xf32>,
      %cst_16 = arith.constant 0.000000e+00 : f32
      %20 = vector.broadcast %cst_16 : f32 to vector<1x32xf32>
      %c0_17 = arith.constant 0 : index
      %c0_18 = arith.constant 0 : index
      %21 = vector.load %arg5[%c0_17, %c0_18] : memref<1x32xf32, #tpu.memory_space<vmem>>, vector<1x32xf32>
      tpu.vector_store %arg5[%c0_17, %c0_18], %20 {strides = array<i32>} : memref<1x32xf32, #tpu.memory_space<vmem>>, vector<1x32xf32>,
    } else {
    }
    %c0 = arith.constant 0 : index
    %c0_1 = arith.constant 0 : index
    %3 = vector.load %arg2[%c0, %c0_1] : memref<8x32xf32, #tpu.memory_space<vmem>>, vector<8x32xf32>
    %c0_2 = arith.constant 0 : index
    %c0_3 = arith.constant 0 : index
    %4 = vector.load %arg4[%c0_2, %c0_3] : memref<1x32xf32, #tpu.memory_space<vmem>>, vector<1x32xf32>
    %cst = arith.constant dense<0.000000e+00> : vector<32xf32>
    %5 = vector.multi_reduction <add>, %3, %cst [0] : vector<8x32xf32> to vector<32xf32>
    %6 = vector.shape_cast %5 : vector<32xf32> to vector<1x32xf32>
    %7 = arith.addf %4, %6 : vector<1x32xf32>
    %c0_4 = arith.constant 0 : index
    %c0_5 = arith.constant 0 : index
    %8 = vector.load %arg4[%c0_4, %c0_5] : memref<1x32xf32, #tpu.memory_space<vmem>>, vector<1x32xf32>
    tpu.vector_store %arg4[%c0_4, %c0_5], %7 {strides = array<i32>} : memref<1x32xf32, #tpu.memory_space<vmem>>, vector<1x32xf32>,
    %c0_6 = arith.constant 0 : index
    %c0_7 = arith.constant 0 : index
    %9 = vector.load %arg5[%c0_6, %c0_7] : memref<1x32xf32, #tpu.memory_space<vmem>>, vector<1x32xf32>
    %10 = arith.mulf %3, %3 : vector<8x32xf32>
    %cst_8 = arith.constant dense<0.000000e+00> : vector<32xf32>
    %11 = vector.multi_reduction <add>, %10, %cst_8 [0] : vector<8x32xf32> to vector<32xf32>
    %12 = vector.shape_cast %11 : vector<32xf32> to vector<1x32xf32>
    %13 = arith.addf %9, %12 : vector<1x32xf32>
    %c0_9 = arith.constant 0 : index
    %c0_10 = arith.constant 0 : index
    %14 = vector.load %arg5[%c0_9, %c0_10] : memref<1x32xf32, #tpu.memory_space<vmem>>, vector<1x32xf32>
    tpu.vector_store %arg5[%c0_9, %c0_10], %13 {strides = array<i32>} : memref<1x32xf32, #tpu.memory_space<vmem>>, vector<1x32xf32>,
    %c0_i32_11 = arith.constant 0 : i32
    %15 = arith.cmpi eq, %arg1, %c0_i32_11 : i32
    %16 = arith.extui %15 : i1 to i32
    %c0_i32_12 = arith.constant 0 : i32
    %17 = arith.cmpi ne, %16, %c0_i32_12 : i32
    scf.if %17 {
      %c0_13 = arith.constant 0 : index
      %c0_14 = arith.constant 0 : index
      %18 = vector.load %arg4[%c0_13, %c0_14] : memref<1x32xf32, #tpu.memory_space<vmem>>, vector<1x32xf32>
      %cst_15 = arith.constant 1.250000e-01 : f32
      %19 = vector.broadcast %cst_15 : f32 to vector<1x32xf32>
      %20 = arith.mulf %18, %19 : vector<1x32xf32>
      %c0_16 = arith.constant 0 : index
      %c0_17 = arith.constant 0 : index
      %21 = vector.load %arg5[%c0_16, %c0_17] : memref<1x32xf32, #tpu.memory_space<vmem>>, vector<1x32xf32>
      %cst_18 = arith.constant 1.250000e-01 : f32
      %22 = vector.broadcast %cst_18 : f32 to vector<1x32xf32>
      %23 = arith.mulf %21, %22 : vector<1x32xf32>
      %24 = arith.mulf %20, %20 : vector<1x32xf32>
      %25 = arith.subf %23, %24 : vector<1x32xf32>
      %26 = arith.mulf %25, %25 : vector<1x32xf32>
      %27 = arith.mulf %20, %20 : vector<1x32xf32>
      %28 = arith.addf %26, %27 : vector<1x32xf32>
      %cst_19 = arith.constant 5.000000e-01 : f32
      %29 = vector.broadcast %cst_19 : f32 to vector<1x32xf32>
      %30 = arith.mulf %28, %29 : vector<1x32xf32>
      %31 = math.log %25 : vector<1x32xf32>
      %cst_20 = arith.constant 0.000000e+00 : f32
      %32 = vector.broadcast %cst_20 : f32 to vector<1x32xf32>
      %33 = arith.subf %32, %31 : vector<1x32xf32>
      %34 = arith.addf %30, %33 : vector<1x32xf32>
      %cst_21 = arith.constant 5.000000e-01 : f32
      %35 = vector.broadcast %cst_21 : f32 to vector<1x32xf32>
      %36 = arith.subf %34, %35 : vector<1x32xf32>
      %cst_22 = arith.constant dense<0.000000e+00> : vector<1xf32>
      %37 = vector.multi_reduction <add>, %36, %cst_22 [1] : vector<1x32xf32> to vector<1xf32>
      %38 = vector.shape_cast %37 : vector<1xf32> to vector<1x1xf32>
      %cst_23 = arith.constant 3.125000e-02 : f32
      %39 = vector.broadcast %cst_23 : f32 to vector<1x1xf32>
      %40 = arith.mulf %38, %39 : vector<1x1xf32>
      %41 = vector.shape_cast %40 : vector<1x1xf32> to vector<1x1xf32>
      %42 = vector.broadcast %41 : vector<1x1xf32> to vector<1x128xf32>
      %c0_24 = arith.constant 0 : index
      %c0_25 = arith.constant 0 : index
      %43 = vector.load %arg3[%c0_24, %c0_25] : memref<1x128xf32, #tpu.memory_space<vmem>>, vector<1x128xf32>
      tpu.vector_store %arg3[%c0_24, %c0_25], %42 {strides = array<i32>} : memref<1x128xf32, #tpu.memory_space<vmem>>, vector<1x128xf32>,
    } else {
    }
    return
  }
  func.func @transform_0(%arg0: i32, %arg1: i32) -> (i32, i32) {
    %c0_i32 = arith.constant 0 : i32
    return %arg1, %arg0 : i32, i32
  }
  func.func @transform_1(%arg0: i32, %arg1: i32) -> (i32, i32) {
    %c0_i32 = arith.constant 0 : i32
    %c0_i32_0 = arith.constant 0 : i32
    return %c0_i32, %arg0 : i32, i32
  }
}

</mosaic_0001>

<bundles_post_ra>
// kernel: tpu_custom_call.1
= control target key start
LH: loop header
LB: loop body
LE: loop exit
PB: predicated region body
PF: predicated region fallthrough
CT: control target
= control target key end

     0   :  { %6 = vsyncpa [#allocation5], 0  ;;  %s185_s0 = inlined_call_operand.hbm [shape: f32[8,32], index: 0, kind: input, shape index: {}]   ;;  %s186_s1 = inlined_call_operand.hbm [shape: f32[1,128], index: 1, kind: output, shape index: {}]  }
   0x1   :  { %7 = vsyncpa [#allocation6], 0  ;;  %s143_s6 = smov [#allocation4]   ;;  %s95_s10 = scalar_lea.hbm %s185_s0, 128 }
   0x2   :  { %s14_s7 = sshll.u32 %s143_s6, 4  ;;  %p96_p0 = scmp.ne.s32.totalorder %s185_s0, %s95_s10  ;;  %s15_s7 = int_to_ptr.vmem [resolvable:$true] %s14_s7 }
   0x3   :  { %p99_p1 = scmp.lt.u32.totalorder %s95_s10, %s185_s0 }
   0x5   :  { %p101_p2 = pnand %p99_p1, %p96_p0 }
   0x7   :  { %104 = shalt.err (!%p101_p2)
}
   0x8   :  { %s105_s15 = scalar_lea.vmem %s15_s7, 128  ;;  %p110_p4 = scmp.lt.s32.totalorder %s15_s7, %s15_s7 }
   0x9   :  { %p106_p3 = scmp.ne.s32.totalorder %s15_s7, %s105_s15  ;;  %p111_p5 = scmp.lt.s32.totalorder %s105_s15, %s105_s15 }
   0xb   :  { %p112_p6 = por %p111_p5, %p110_p4 }
   0xd   :  { %p113_p7 = pnand %p112_p6, %p106_p3 }
   0xf   :  { %116 = shalt.err (!%p113_p7)
}
  0x10   :  { %17 = dma.hbm_to_vmem [thread:$0]  %s185_s0, 128, %s15_s7, [#allocation5]  }
  0x11   :  { %139 = dma.done.wait [#allocation5], 128  }
  0x12   :  { %140 = vsyncadd [#allocation5], 4294967168  ;;  %vm25_vm0 = vcmask 253952   ;;  %v144_v0 = vmov 0.0   ;;  %vm30_vm1 = vcmask 261120   ;;  %v28_v1 = vld [vmem:[#allocation4] sm:$0xff] }
  0x13   :  { %26 = vst.msk [vmem:[#allocation2] sm:$0x1] %vm25_vm0, %v144_v0  ;;  %27 = vst.msk [vmem:[#allocation3] sm:$0x1] %vm25_vm0, %v144_v0  ;;  %v31_v2 = vsel %vm30_vm1, %v28_v1, 0.0  ;;  %v42_v3 = vmul.f32 %v28_v1, %v28_v1  ;;  %s145_s0 = smov [#allocation7]  }
  0x14   :  { %v32_v4 = vrot.slane %v31_v2, 4  ;;  %s80_s18 = sshll.u32 %s145_s0, 4  ;;  %s81_s18 = int_to_ptr.vmem [resolvable:$true] %s80_s18 }
  0x15   :  { %v43_v5 = vsel %vm30_vm1, %v42_v3, 0.0  ;;  %s117_s19 = scalar_lea.vmem %s81_s18, 16  ;;  %s121_s20 = scalar_lea.vmem %s81_s18, 32 }
  0x16   :  { %v33_v6 = vadd.f32 %v32_v4, %v31_v2  ;;  %v44_v7 = vrot.slane %v43_v5, 4  ;;  %p118_p8 = scmp.ne.s32.totalorder %s81_s18, %s117_s19  ;;  %p122_p9 = scmp.lt.s32.totalorder %s81_s18, %s81_s18 }
  0x17   :  { %p123_p10 = scmp.lt.s32.totalorder %s121_s20, %s117_s19 }
  0x18   :  { %v34_v8 = vrot.slane %v33_v6, 2  ;;  %v45_v9 = vadd.f32 %v44_v7, %v43_v5 }
  0x19   :  { %p124_p11 = por %p123_p10, %p122_p9 }
  0x1a   :  { %v35_v10 = vadd.f32 %v34_v8, %v33_v6  ;;  %v46_v11 = vrot.slane %v45_v9, 2  ;;  %v29_v14 = vld [vmem:[#allocation2] sm:$0x1]  ;;  %v41_v17 = vld [vmem:[#allocation3] sm:$0x1] }
  0x1b   :  { %p125_p12 = pnand %p124_p11, %p118_p8 }
  0x1c   :  { %v36_v12 = vrot.slane %v35_v10, 1  ;;  %v47_v13 = vadd.f32 %v46_v11, %v45_v9 }
  0x1e   :  { %v37_v15 = vadd.f32 %v36_v12, %v35_v10  ;;  %v48_v16 = vrot.slane %v47_v13, 1 }
  0x20   :  { %v38_v18 = vadd.f32 %v37_v15, %v29_v14  ;;  %v49_v19 = vadd.f32 %v48_v16, %v47_v13 }
  0x22   :  { %40 = vst.msk [vmem:[#allocation2] sm:$0x1] %vm25_vm0, %v38_v18  ;;  %v50_v20 = vadd.f32 %v49_v19, %v41_v17 }
  0x24   :  { %51 = vst.msk [vmem:[#allocation3] sm:$0x1] %vm25_vm0, %v50_v20 }
  0x29   :  { %v55_v21 = vld [vmem:[#allocation2] sm:$0x1] }
  0x2a   :  { %v56_v22 = vmul.f32 0.125, %v55_v21 }
  0x2b   :  { %v57_v23 = vld [vmem:[#allocation3] sm:$0x1] }
  0x2c   :  { %v58_v24 = vmul.f32 0.125, %v57_v23  ;;  %v59_v25 = vmul.f32 %v56_v22, %v56_v22 }
  0x2e   :  { %v60_v26 = vsub.f32 %v58_v24, %v59_v25 }
  0x30   :  { %93 = vlog2.f32 %v60_v26  ;;  %v61_v27 = vmul.f32 %v60_v26, %v60_v26 }
  0x32   :  { %v62_v28 = vadd.f32 %v61_v27, %v59_v25 }
  0x34   :  { %v63_v30 = vmul.f32 0.5, %v62_v28 }
  0x3a   :  { %v94_v29 = vpop.eup %93 }
  0x3b   :  { %v65_v31 = vmul.f32 0.6931472, %v94_v29 }
  0x3d   :  { %v66_v32 = vsub.f32 0.0, %v65_v31 }
  0x3f   :  { %v67_v33 = vadd.f32 %v66_v32, %v63_v30 }
  0x41   :  { %v89_v34 = vadd.f32 -0.5, %v67_v33 }
  0x43   :  { %v69_v35 = vsel %vm25_vm0, %v89_v34, 0.0 }
  0x44   :  { %70 = vadd.xlane.f32.xlu0 %v69_v35 }
  0xd1   :  { %v71_v36 = vpop.xlane.xlu0 %70 }
  0xd2   :  { %v72_v37 = vmul.f32 0.03125, %v71_v36 }
  0xd4   :  { %73 = vst [vmem:[#allocation7] sm:$0x1] %v72_v37 }
  0xd5   :  { %128 = shalt.err (!%p125_p12)
}
  0xd6   :  { %s129_s23 = scalar_lea.hbm %s186_s1, 16 }
  0xd7   :  { %p130_p13 = scmp.ne.s32.totalorder %s186_s1, %s129_s23  ;;  %p133_p0 = scmp.lt.u32.totalorder %s129_s23, %s186_s1 }
  0xd9   :  { %p135_p1 = pnand %p133_p0, %p130_p13 }
  0xdb   :  { %138 = shalt.err (!%p135_p1)
}
  0xdc   :  { %83 = dma.vmem_to_hbm [thread:$0]  %s81_s18, 16, %s186_s1, [#allocation6]  }
  0xdd   :  { %141 = dma.done.wait [#allocation6], 16  }
  0xde   :  { %142 = vsyncadd [#allocation6], 4294967280 }
  0xdf   :  { %87 = vsyncpa [#allocation5], 1 }
  0xe0   :  { %88 = vsyncpa [#allocation6], 1 }

</bundles_post_ra>
